<compile_context>
chip_gen: v5e
topology: v5e:2x2
jax: 0.10.0
libtpu: 0.0.40
codegen_flags: <defaults>
</compile_context>

<pallas_src>
import functools
from typing import NamedTuple

import jax
import jax.numpy as jnp
from jax.experimental import pallas as pl
from jax.experimental.pallas import tpu as pltpu


_RESIDENT_ADJ_BUDGET = 36 << 20   # bytes for the (double-buffered) bf16 adj
_VMEM_LIMIT_CAP = 48 << 20        # stay well inside v7x's 64 MiB physical VMEM


def _round_up(x, m):
    return (x + m - 1) // m * m


class _Plan(NamedTuple):
    resident: bool   # adj fully VMEM-resident (fused single-kernel path)
    n_pad: int       # padded node count
    tm: int          # row-tile size
    tk: int          # adj k-tile size (streaming path only)


def _plan(n, force_streaming=False):
    """Pick padding / tiling and whether adj can live in VMEM."""
    n_pad = _round_up(n, 128)
    # Assume Pallas double-buffers even the constant-index adj block.
    resident = (not force_streaming) and (
        4 * n_pad * n_pad <= _RESIDENT_ADJ_BUDGET)
    if resident:
        tm = next(t for t in (512, 384, 256, 128) if n_pad % t == 0)
        return _Plan(True, n_pad, tm, n_pad)
    # Streaming fallback: larger tiles per review (per-step overhead ~0.35us,
    # mem-bound kernels only approach HBM roofline at 512+ tiles).
    n_pad = _round_up(n, 512)
    tk = 1024 if n_pad % 1024 == 0 else 512
    return _Plan(False, n_pad, 512, tk)


# ----------------------------------------------------------------------------
# Fused kernel (adj VMEM-resident): feature transform + J hops + dense head.
# ----------------------------------------------------------------------------
def _fused_gcnn_kernel(x_ref, adj_ref, ft_ref, dense_ref, out_ref,
                       z_a_ref, z_b_ref, *, tm):
    """grid = (jump j [outer, arbitrary], row tile i [inner, arbitrary]).

    x/adj/ft/dense: full arrays with constant index maps -> DMA'd from HBM
    exactly once.  out_ref: full (n_pad, C_pad) block, VMEM-resident for the
    whole grid, written back to HBM once at the end.  z_a/z_b: f32 ping-pong
    carry for Z_j (never touches HBM).
    """
    j = pl.program_id(0)
    i = pl.program_id(1)

    @pl.when(jnp.logical_and(j == 0, i == 0))
    def _prologue():
        # xh = x @ feature_trans for ALL rows -> carry slot A,
        # and zero the logits accumulator (the resident output block).
        z_a_ref[...] = jnp.dot(x_ref[...], ft_ref[...],
                               preferred_element_type=jnp.float32)
        out_ref[...] = jnp.zeros_like(out_ref)

    rows = pl.ds(pl.multiple_of(i * tm, tm), tm)

    def _hop(src_ref, dst_ref):
        # Z_j[rows] = adj[rows, :] @ Z_{j-1}; bf16 MXU operands, f32 carry.
        z_new = jnp.dot(adj_ref[rows, :],
                        src_ref[...].astype(jnp.bfloat16),
                        preferred_element_type=jnp.float32)
        dst_ref[rows, :] = z_new
        # Fused dense epilogue: logits[rows] += Z_j[rows] @ dense_j.
        # dense is laid out (J, H, C_pad), jump-major like torch's reshape,
        # so no concat of the Z_j is ever materialized.
        out_ref[rows, :] += jnp.dot(z_new.astype(jnp.bfloat16), dense_ref[j],
                                    preferred_element_type=jnp.float32)

    # Ping-pong the carry: even jumps read A / write B, odd jumps the reverse.
    @pl.when(j % 2 == 0)
    def _even():
        _hop(z_a_ref, z_b_ref)

    @pl.when(j % 2 == 1)
    def _odd():
        _hop(z_b_ref, z_a_ref)


# ----------------------------------------------------------------------------
# Streaming fallback kernels (adj too large for VMEM residency).
# ----------------------------------------------------------------------------
def _feat_kernel(x_ref, ft_ref, xh_ref):
    xh_ref[...] = jnp.dot(x_ref[...], ft_ref[...],
                          preferred_element_type=jnp.float32
                          ).astype(xh_ref.dtype)


def _propagate_kernel(adj_ref, z_ref, out_ref, acc_ref):
    @pl.when(pl.program_id(1) == 0)
    def _init():
        acc_ref[...] = jnp.zeros_like(acc_ref)

    acc_ref[...] += jnp.dot(adj_ref[...], z_ref[...],
                            preferred_element_type=jnp.float32)

    @pl.when(pl.program_id(1) == pl.num_programs(1) - 1)
    def _finalize():
        out_ref[...] = acc_ref[...].astype(out_ref.dtype)


def _dense_kernel(zcat_ref, dense_ref, out_ref):
    out_ref[...] = jnp.dot(zcat_ref[...], dense_ref[...],
                           preferred_element_type=jnp.float32)


# ----------------------------------------------------------------------------
# Wrappers
# ----------------------------------------------------------------------------
def prepare_params(feature_trans, dense, *, jump_number):
    """One-time parameter prep: bf16 cast, dense transpose + lane padding,
    reshaped to (J, H, C_pad) jump-major slabs for the fused dense epilogue."""
    hidden = feature_trans.shape[1]
    class_number = dense.shape[0]
    assert dense.shape[1] == hidden * jump_number
    ft_b = feature_trans.astype(jnp.bfloat16)
    c_pad = _round_up(class_number, 128)
    dense_t = jnp.pad(dense.T.astype(jnp.bfloat16),
                      ((0, 0), (0, c_pad - class_number)))    # (J*H, C_pad)
    dense_b = dense_t.reshape(jump_number, hidden, c_pad)     # (J, H, C_pad)
    return ft_b, dense_b


def prepare_adj(adj, *, force_streaming=False):
    """One-time adjacency prep (bf16 cast + zero padding of the node dim).

    adj is typically fixed across many forwards, so the f32 read + bf16
    padded write of the full N x N matrix is paid once here, not per call."""
    n = adj.shape[0]
    plan = _plan(n, force_streaming)
    pad = plan.n_pad - n
    return jnp.pad(adj.astype(jnp.bfloat16), ((0, pad), (0, pad)))


@functools.partial(
    jax.jit,
    static_argnames=("jump_number", "class_number", "force_streaming"))
def gcnn_forward(x, adj_b, feature_trans_b, dense_b, *, jump_number,
                 class_number, force_streaming=False):
    n, f_in = x.shape
    hidden = feature_trans_b.shape[1]
    c_pad = dense_b.shape[2]
    plan = _plan(n, force_streaming)
    n_pad, tm, tk = plan.n_pad, plan.tm, plan.tk
    assert adj_b.shape == (n_pad, n_pad), (
        "adjacency must come from prepare_adj() with matching settings")

    # x is tiny ((N, F_in)); padding/casting it per call is negligible.
    x_b = jnp.pad(x.astype(jnp.bfloat16), ((0, n_pad - n), (0, 0)))

    if plan.resident:
        # ---- fused single-kernel path: adj read from HBM exactly once ----
        est_vmem = (
            2 * n_pad * n_pad * 2            # adj (assume double-buffered)
            + 2 * n_pad * c_pad * 4          # resident logits block
            + 2 * n_pad * hidden * 4         # Z ping-pong carries (f32)
            + 2 * n_pad * f_in * 2           # x
            + 2 * jump_number * hidden * c_pad * 2
            + 2 * f_in * hidden * 2)
        vmem_limit = int(min(_VMEM_LIMIT_CAP,
                             max(32 << 20, est_vmem * 5 // 4)))

        # NOTE: both grid axes are "arbitrary": jump j+1 needs every row of
        # Z_j, so row tiles cannot be megacore-sharded without cross-core
        # sync; reading adj once is worth far more than the v7x 2-TC split
        # for this HBM-bound kernel.
        # TODO(synk): for very large resident graphs on v7x, split rows over
        # the two TensorCores with an explicit per-jump semaphore barrier.
        logits_pad = pl.pallas_call(
            functools.partial(_fused_gcnn_kernel, tm=tm),
            out_shape=jax.ShapeDtypeStruct((n_pad, c_pad), jnp.float32),
            grid=(jump_number, n_pad // tm),
            in_specs=[
                pl.BlockSpec((n_pad, f_in), lambda j, i: (0, 0)),
                pl.BlockSpec((n_pad, n_pad), lambda j, i: (0, 0)),  # resident
                pl.BlockSpec((f_in, hidden), lambda j, i: (0, 0)),
                pl.BlockSpec((jump_number, hidden, c_pad),
                             lambda j, i: (0, 0, 0)),
            ],
            out_specs=pl.BlockSpec((n_pad, c_pad), lambda j, i: (0, 0)),
            scratch_shapes=[pltpu.VMEM((n_pad, hidden), jnp.float32),
                            pltpu.VMEM((n_pad, hidden), jnp.float32)],
            compiler_params=pltpu.CompilerParams(
                dimension_semantics=("arbitrary", "arbitrary"),
                vmem_limit_bytes=vmem_limit),
        )(x_b, adj_b, feature_trans_b, dense_b)
        return logits_pad[:n, :class_number]

    # ---- streaming fallback: adj tiled from HBM (large graphs only) ----
    grid_rows = n_pad // tm

    xh = pl.pallas_call(
        _feat_kernel,
        out_shape=jax.ShapeDtypeStruct((n_pad, hidden), jnp.bfloat16),
        grid=(grid_rows,),
        in_specs=[pl.BlockSpec((tm, f_in), lambda i: (i, 0)),
                  pl.BlockSpec((f_in, hidden), lambda i: (0, 0))],
        out_specs=pl.BlockSpec((tm, hidden), lambda i: (i, 0)),
        compiler_params=pltpu.CompilerParams(
            dimension_semantics=("parallel",)),
    )(x_b, feature_trans_b)

    propagate = pl.pallas_call(
        _propagate_kernel,
        out_shape=jax.ShapeDtypeStruct((n_pad, hidden), jnp.bfloat16),
        grid=(grid_rows, n_pad // tk),
        in_specs=[pl.BlockSpec((tm, tk), lambda i, k: (i, k)),       # adj tile
                  pl.BlockSpec((tk, hidden), lambda i, k: (k, 0))],  # Z_j tile
        out_specs=pl.BlockSpec((tm, hidden), lambda i, k: (i, 0)),
        scratch_shapes=[pltpu.VMEM((tm, hidden), jnp.float32)],
        compiler_params=pltpu.CompilerParams(
            dimension_semantics=("parallel", "arbitrary")),
    )

    zs = []
    z = xh
    for _ in range(jump_number):
        z = propagate(adj_b, z)
        zs.append(z)
    z_cat = jnp.concatenate(zs, axis=1) if jump_number > 1 else zs[0]

    dense_flat = dense_b.reshape(jump_number * hidden, c_pad)
    logits_pad = pl.pallas_call(
        _dense_kernel,
        out_shape=jax.ShapeDtypeStruct((n_pad, c_pad), jnp.float32),
        grid=(grid_rows,),
        in_specs=[pl.BlockSpec((tm, hidden * jump_number), lambda i: (i, 0)),
                  pl.BlockSpec((hidden * jump_number, c_pad),
                               lambda i: (0, 0))],
        out_specs=pl.BlockSpec((tm, c_pad), lambda i: (i, 0)),
        compiler_params=pltpu.CompilerParams(
            dimension_semantics=("parallel",)),
    )(z_cat, dense_flat)
    return logits_pad[:n, :class_number]


# ----------------------------------------------------------------------------
# Reference + test
# ----------------------------------------------------------------------------
def _xavier_uniform(key, shape, gain):
    fan_in, fan_out = shape[0], shape[1]
    limit = gain * jnp.sqrt(6.0 / (fan_in + fan_out))
    return jax.random.uniform(key, shape, jnp.float32, -limit, limit)


def _reference_forward(x, adj, feature_trans, dense, jump_number):
    """Plain-JAX f32 mirror of the PyTorch forward."""
    xh = x @ feature_trans
    zs = []
    for i in range(jump_number):
        temp = adj
        for _ in range(i):
            temp = temp @ adj
        zs.append(temp @ xh)
    # torch.stack + Z[:, i, :].reshape(-1) is jump-major per node -> concat
    # along the feature axis in jump order.
    z_cat = jnp.concatenate(zs, axis=1)          # (N, J*H)
    return z_cat @ dense.T                       # (N, C)


def _run_case(key, *, n_nodes, input_feature_number, hidden_feature_number,
              class_number, jump_number, force_streaming=False):
    k_x, k_adj, k_ft, k_dense = jax.random.split(key, 4)
    x = jax.random.normal(k_x, (n_nodes, input_feature_number), jnp.float32)
    adj_raw = jax.random.uniform(k_adj, (n_nodes, n_nodes), jnp.float32)
    adj = (adj_raw + adj_raw.T) / (2.0 * n_nodes)   # symmetric, normalized-ish

    gain = 1.414
    feature_trans = _xavier_uniform(
        k_ft, (input_feature_number, hidden_feature_number), gain)
    dense = _xavier_uniform(
        k_dense, (class_number, hidden_feature_number * jump_number), gain)
    # NOTE: self.W is declared in __init__ but never used in forward -> omitted.

    ft_b, dense_b = prepare_params(feature_trans, dense,
                                   jump_number=jump_number)
    adj_b = prepare_adj(adj, force_streaming=force_streaming)
    logits = gcnn_forward(x, adj_b, ft_b, dense_b,
                          jump_number=jump_number, class_number=class_number,
                          force_streaming=force_streaming)
    logits = jax.block_until_ready(logits)

    ref = _reference_forward(x, adj, feature_trans, dense, jump_number)
    assert logits.shape == (n_nodes, class_number)
    # bf16 MXU operands (f32 accumulation / f32 Z carry) -> loose tolerance.
    assert jnp.allclose(logits, ref, rtol=2e-2, atol=2e-2), (
        f"mismatch vs reference (N={n_nodes}, J={jump_number}, "
        f"streaming={force_streaming}): "
        f"max abs err {float(jnp.max(jnp.abs(logits - ref)))}")


if __name__ == "__main__":
    key = jax.random.PRNGKey(0)
    k1, k2, k3 = jax.random.split(key, 3)

    # Case 1: shapes implied by the module defaults (single row tile).
    _run_case(k1, n_nodes=16, input_feature_number=8,
              hidden_feature_number=32, class_number=4, jump_number=2)
    # Case 2: N=300 -> n_pad=384, grid=(3 jumps, 1 row tile), resident adj.
    _run_case(k2, n_nodes=300, input_feature_number=8,
              hidden_feature_number=32, class_number=4, jump_number=3)
    # Case 3: force the large-graph streaming fallback path (kept small here).
    _run_case(k3, n_nodes=300, input_feature_number=8,
              hidden_feature_number=32, class_number=4, jump_number=2,
              force_streaming=True)

    print("KERNEL_OK")
</pallas_src>

<mosaic_0001>
module attributes {stable_mosaic.version = 11 : i64} {
  func.func @_fused_gcnn_kernel(%arg0: i32, %arg1: i32, %arg2: memref<128x8xbf16, #tpu.memory_space<vmem>>, %arg3: memref<128x128xbf16, #tpu.memory_space<vmem>>, %arg4: memref<8x32xbf16, #tpu.memory_space<vmem>>, %arg5: memref<2x32x128xbf16, #tpu.memory_space<vmem>>, %arg6: memref<128x128xf32, #tpu.memory_space<vmem>>, %arg7: memref<128x32xf32, #tpu.memory_space<vmem>>, %arg8: memref<128x32xf32, #tpu.memory_space<vmem>>) attributes {dimension_semantics = [#tpu.dimension_semantics<arbitrary>, #tpu.dimension_semantics<arbitrary>], iteration_bounds = array<i64: 2, 1>, scalar_prefetch = 0 : i64, scratch_operands = 2 : i64, tpu.core_type = #tpu.core_type<tc>, window_params = [{pipeline_mode = #tpu.pipeline_mode<synchronous>, transform_indices = @transform_0, window_bounds = array<i64: 128, 8>}, {pipeline_mode = #tpu.pipeline_mode<synchronous>, transform_indices = @transform_1, window_bounds = array<i64: 128, 128>}, {pipeline_mode = #tpu.pipeline_mode<synchronous>, transform_indices = @transform_2, window_bounds = array<i64: 8, 32>}, {pipeline_mode = #tpu.pipeline_mode<synchronous>, transform_indices = @transform_3, window_bounds = array<i64: 2, 32, 128>}, {pipeline_mode = #tpu.pipeline_mode<synchronous>, transform_indices = @transform_4, window_bounds = array<i64: 128, 128>}]} {
    %c0_i32 = arith.constant 0 : i32
    %0 = arith.cmpi eq, %arg0, %c0_i32 : i32
    %c0_i32_0 = arith.constant 0 : i32
    %1 = arith.cmpi eq, %arg1, %c0_i32_0 : i32
    %2 = arith.andi %0, %1 : i1
    %3 = arith.extui %2 : i1 to i32
    %c0_i32_1 = arith.constant 0 : i32
    %4 = arith.cmpi ne, %3, %c0_i32_1 : i32
    scf.if %4 {
      %c0 = arith.constant 0 : index
      %c0_16 = arith.constant 0 : index
      %33 = vector.load %arg2[%c0, %c0_16] : memref<128x8xbf16, #tpu.memory_space<vmem>>, vector<128x8xbf16>
      %c0_17 = arith.constant 0 : index
      %c0_18 = arith.constant 0 : index
      %34 = vector.load %arg4[%c0_17, %c0_18] : memref<8x32xbf16, #tpu.memory_space<vmem>>, vector<8x32xbf16>
      %cst = arith.constant dense<0.000000e+00> : vector<128x32xf32>
      %35 = tpu.matmul %33, %34, %cst {dimension_numbers = #tpu.dot_dimension_numbers<[1], [0], [0], [1], [0, 0, 1, 1], [], []>} : vector<128x8xbf16>, vector<8x32xbf16>, vector<128x32xf32> -> vector<128x32xf32>
      %c0_19 = arith.constant 0 : index
      %c0_20 = arith.constant 0 : index
      %36 = vector.load %arg7[%c0_19, %c0_20] : memref<128x32xf32, #tpu.memory_space<vmem>>, vector<128x32xf32>
      tpu.vector_store %arg7[%c0_19, %c0_20], %35 {strides = array<i32>} : memref<128x32xf32, #tpu.memory_space<vmem>>, vector<128x32xf32>,
      %cst_21 = arith.constant 0.000000e+00 : f32
      %37 = vector.broadcast %cst_21 : f32 to vector<128x128xf32>
      %c0_22 = arith.constant 0 : index
      %c0_23 = arith.constant 0 : index
      %38 = vector.load %arg6[%c0_22, %c0_23] : memref<128x128xf32, #tpu.memory_space<vmem>>, vector<128x128xf32>
      tpu.vector_store %arg6[%c0_22, %c0_23], %37 {strides = array<i32>} : memref<128x128xf32, #tpu.memory_space<vmem>>, vector<128x128xf32>,
    } else {
    }
    %c128_i32 = arith.constant 128 : i32
    %5 = arith.muli %arg1, %c128_i32 : i32
    %6 = tpu.assume_multiple %5, 128 : i32
    %c2_i32 = arith.constant 2 : i32
    %c0_i32_2 = arith.constant 0 : i32
    %7 = arith.cmpi eq, %c2_i32, %c0_i32_2 : i32
    %c1_i32 = arith.constant 1 : i32
    %8 = arith.select %7, %c1_i32, %c2_i32 : i32
    %9 = arith.remsi %arg0, %8 : i32
    %c0_i32_3 = arith.constant 0 : i32
    %10 = arith.cmpi ne, %9, %c0_i32_3 : i32
    %c0_i32_4 = arith.constant 0 : i32
    %11 = arith.cmpi slt, %9, %c0_i32_4 : i32
    %c0_i32_5 = arith.constant 0 : i32
    %12 = arith.cmpi slt, %8, %c0_i32_5 : i32
    %13 = arith.xori %11, %12 : i1
    %14 = arith.andi %13, %10 : i1
    %15 = arith.addi %9, %8 : i32
    %16 = arith.select %14, %15, %9 : i32
    %c0_i32_6 = arith.constant 0 : i32
    %17 = arith.cmpi eq, %16, %c0_i32_6 : i32
    %18 = arith.extui %17 : i1 to i32
    %c0_i32_7 = arith.constant 0 : i32
    %19 = arith.cmpi ne, %18, %c0_i32_7 : i32
    scf.if %19 {
      %33 = arith.index_cast %6 : i32 to index
      %c0 = arith.constant 0 : index
      %34 = vector.load %arg3[%33, %c0] : memref<128x128xbf16, #tpu.memory_space<vmem>>, vector<128x128xbf16>
      %c0_16 = arith.constant 0 : index
      %c0_17 = arith.constant 0 : index
      %35 = vector.load %arg7[%c0_16, %c0_17] : memref<128x32xf32, #tpu.memory_space<vmem>>, vector<128x32xf32>
      %36 = arith.truncf %35 : vector<128x32xf32> to vector<128x32xbf16>
      %cst = arith.constant dense<0.000000e+00> : vector<128x32xf32>
      %37 = tpu.matmul %34, %36, %cst {dimension_numbers = #tpu.dot_dimension_numbers<[1], [0], [0], [1], [0, 0, 1, 1], [], []>} : vector<128x128xbf16>, vector<128x32xbf16>, vector<128x32xf32> -> vector<128x32xf32>
      %38 = arith.index_cast %6 : i32 to index
      %c0_18 = arith.constant 0 : index
      %39 = vector.load %arg8[%38, %c0_18] : memref<128x32xf32, #tpu.memory_space<vmem>>, vector<128x32xf32>
      tpu.vector_store %arg8[%38, %c0_18], %37 {strides = array<i32>} : memref<128x32xf32, #tpu.memory_space<vmem>>, vector<128x32xf32>,
      %40 = arith.index_cast %6 : i32 to index
      %c0_19 = arith.constant 0 : index
      %41 = vector.load %arg6[%40, %c0_19] : memref<128x128xf32, #tpu.memory_space<vmem>>, vector<128x128xf32>
      %42 = arith.truncf %37 : vector<128x32xf32> to vector<128x32xbf16>
      %43 = arith.index_cast %arg0 : i32 to index
      %c0_20 = arith.constant 0 : index
      %c0_21 = arith.constant 0 : index
      %44 = vector.load %arg5[%43, %c0_20, %c0_21] : memref<2x32x128xbf16, #tpu.memory_space<vmem>>, vector<1x32x128xbf16>
      %45 = vector.shape_cast %44 : vector<1x32x128xbf16> to vector<32x128xbf16>
      %cst_22 = arith.constant dense<0.000000e+00> : vector<128x128xf32>
      %46 = tpu.matmul %42, %45, %cst_22 {dimension_numbers = #tpu.dot_dimension_numbers<[1], [0], [0], [1], [0, 0, 1, 1], [], []>} : vector<128x32xbf16>, vector<32x128xbf16>, vector<128x128xf32> -> vector<128x128xf32>
      %47 = arith.addf %41, %46 : vector<128x128xf32>
      %48 = arith.index_cast %6 : i32 to index
      %c0_23 = arith.constant 0 : index
      %49 = vector.load %arg6[%48, %c0_23] : memref<128x128xf32, #tpu.memory_space<vmem>>, vector<128x128xf32>
      tpu.vector_store %arg6[%48, %c0_23], %47 {strides = array<i32>} : memref<128x128xf32, #tpu.memory_space<vmem>>, vector<128x128xf32>,
    } else {
    }
    %c2_i32_8 = arith.constant 2 : i32
    %c0_i32_9 = arith.constant 0 : i32
    %20 = arith.cmpi eq, %c2_i32_8, %c0_i32_9 : i32
    %c1_i32_10 = arith.constant 1 : i32
    %21 = arith.select %20, %c1_i32_10, %c2_i32_8 : i32
    %22 = arith.remsi %arg0, %21 : i32
    %c0_i32_11 = arith.constant 0 : i32
    %23 = arith.cmpi ne, %22, %c0_i32_11 : i32
    %c0_i32_12 = arith.constant 0 : i32
    %24 = arith.cmpi slt, %22, %c0_i32_12 : i32
    %c0_i32_13 = arith.constant 0 : i32
    %25 = arith.cmpi slt, %21, %c0_i32_13 : i32
    %26 = arith.xori %24, %25 : i1
    %27 = arith.andi %26, %23 : i1
    %28 = arith.addi %22, %21 : i32
    %29 = arith.select %27, %28, %22 : i32
    %c1_i32_14 = arith.constant 1 : i32
    %30 = arith.cmpi eq, %29, %c1_i32_14 : i32
    %31 = arith.extui %30 : i1 to i32
    %c0_i32_15 = arith.constant 0 : i32
    %32 = arith.cmpi ne, %31, %c0_i32_15 : i32
    scf.if %32 {
      %33 = arith.index_cast %6 : i32 to index
      %c0 = arith.constant 0 : index
      %34 = vector.load %arg3[%33, %c0] : memref<128x128xbf16, #tpu.memory_space<vmem>>, vector<128x128xbf16>
      %c0_16 = arith.constant 0 : index
      %c0_17 = arith.constant 0 : index
      %35 = vector.load %arg8[%c0_16, %c0_17] : memref<128x32xf32, #tpu.memory_space<vmem>>, vector<128x32xf32>
      %36 = arith.truncf %35 : vector<128x32xf32> to vector<128x32xbf16>
      %cst = arith.constant dense<0.000000e+00> : vector<128x32xf32>
      %37 = tpu.matmul %34, %36, %cst {dimension_numbers = #tpu.dot_dimension_numbers<[1], [0], [0], [1], [0, 0, 1, 1], [], []>} : vector<128x128xbf16>, vector<128x32xbf16>, vector<128x32xf32> -> vector<128x32xf32>
      %38 = arith.index_cast %6 : i32 to index
      %c0_18 = arith.constant 0 : index
      %39 = vector.load %arg7[%38, %c0_18] : memref<128x32xf32, #tpu.memory_space<vmem>>, vector<128x32xf32>
      tpu.vector_store %arg7[%38, %c0_18], %37 {strides = array<i32>} : memref<128x32xf32, #tpu.memory_space<vmem>>, vector<128x32xf32>,
      %40 = arith.index_cast %6 : i32 to index
      %c0_19 = arith.constant 0 : index
      %41 = vector.load %arg6[%40, %c0_19] : memref<128x128xf32, #tpu.memory_space<vmem>>, vector<128x128xf32>
      %42 = arith.truncf %37 : vector<128x32xf32> to vector<128x32xbf16>
      %43 = arith.index_cast %arg0 : i32 to index
      %c0_20 = arith.constant 0 : index
      %c0_21 = arith.constant 0 : index
      %44 = vector.load %arg5[%43, %c0_20, %c0_21] : memref<2x32x128xbf16, #tpu.memory_space<vmem>>, vector<1x32x128xbf16>
      %45 = vector.shape_cast %44 : vector<1x32x128xbf16> to vector<32x128xbf16>
      %cst_22 = arith.constant dense<0.000000e+00> : vector<128x128xf32>
      %46 = tpu.matmul %42, %45, %cst_22 {dimension_numbers = #tpu.dot_dimension_numbers<[1], [0], [0], [1], [0, 0, 1, 1], [], []>} : vector<128x32xbf16>, vector<32x128xbf16>, vector<128x128xf32> -> vector<128x128xf32>
      %47 = arith.addf %41, %46 : vector<128x128xf32>
      %48 = arith.index_cast %6 : i32 to index
      %c0_23 = arith.constant 0 : index
      %49 = vector.load %arg6[%48, %c0_23] : memref<128x128xf32, #tpu.memory_space<vmem>>, vector<128x128xf32>
      tpu.vector_store %arg6[%48, %c0_23], %47 {strides = array<i32>} : memref<128x128xf32, #tpu.memory_space<vmem>>, vector<128x128xf32>,
    } else {
    }
    return
  }
  func.func @transform_0(%arg0: i32, %arg1: i32) -> (i32, i32) {
    %c0_i32 = arith.constant 0 : i32
    %c0_i32_0 = arith.constant 0 : i32
    %c0_i32_1 = arith.constant 0 : i32
    return %c0_i32, %c0_i32_0 : i32, i32
  }
  func.func @transform_1(%arg0: i32, %arg1: i32) -> (i32, i32) {
    %c0_i32 = arith.constant 0 : i32
    %c0_i32_0 = arith.constant 0 : i32
    %c0_i32_1 = arith.constant 0 : i32
    return %c0_i32, %c0_i32_0 : i32, i32
  }
  func.func @transform_2(%arg0: i32, %arg1: i32) -> (i32, i32) {
    %c0_i32 = arith.constant 0 : i32
    %c0_i32_0 = arith.constant 0 : i32
    %c0_i32_1 = arith.constant 0 : i32
    return %c0_i32, %c0_i32_0 : i32, i32
  }
  func.func @transform_3(%arg0: i32, %arg1: i32) -> (i32, i32, i32) {
    %c0_i32 = arith.constant 0 : i32
    %c0_i32_0 = arith.constant 0 : i32
    %c0_i32_1 = arith.constant 0 : i32
    %c0_i32_2 = arith.constant 0 : i32
    return %c0_i32, %c0_i32_0, %c0_i32_1 : i32, i32, i32
  }
  func.func @transform_4(%arg0: i32, %arg1: i32) -> (i32, i32) {
    %c0_i32 = arith.constant 0 : i32
    %c0_i32_0 = arith.constant 0 : i32
    %c0_i32_1 = arith.constant 0 : i32
    return %c0_i32, %c0_i32_0 : i32, i32
  }
}

</mosaic_0001>

<bundles_post_ra>
// kernel: gcnn_forward.1
= control target key start
LH: loop header
LB: loop body
LE: loop exit
PB: predicated region body
PF: predicated region fallthrough
CT: control target
= control target key end

     0   :  { %9 = vsyncpa [#allocation5], 0  ;;  %s1383_s15 = smov 0   ;;  %s1385_s16 = smov 0   ;;  %s1816_s0 = inlined_call_operand.vmem [shape: bf16[128,8], index: 0, kind: input, shape index: {}]   ;;  %s1817_s1 = inlined_call_operand.vmem [shape: bf16[128,128], index: 1, kind: input, shape index: {}]   ;;  %s1818_s2 = inlined_call_operand.hbm [shape: bf16[8,32], index: 2, kind: input, shape index: {}]   ;;  %s1819_s3 = inlined_call_operand.vmem [shape: bf16[2,32,128], index: 3, kind: input, shape index: {}]   ;;  %s1820_s4 = inlined_call_operand.vmem [shape: f32[128,128], index: 4, kind: output, shape index: {}]  }
   0x1   :  { %s1387_s17 = smov 0  }
   0x2 LB: > { %s1055_s18 = sadd.s32 4294967295, %s1354_s17   ;;  %s27_s19 = sadd.s32 1, %s1350_s16  ;;  %s1354_s17 = sphi %s1387_s17, %s15_s17   ;;  %s1350_s16 = sphi %s1385_s16, %s1822_s16   ;;  %s1346_s15 = sphi %s1383_s15, %s1821_s15  }
   0x3   : > { %p29_p0 = scmp.ge.s32.totalorder %s27_s19, 2  ;;  %p1056_p1 = scmp.ge.s32.totalorder %s1354_s17, 1 }
   0x4   : > { %p137_p2 = scmp.lt.s32.totalorder %s1354_s17, 3  ;;  %p1270_p4 = scmp.eq.s32.totalorder %s1055_s18, 0 }
   0x5   : > { %s1824_s19 = smov (%p29_p0, %s27_s19), 0  ;;  %s155_s22 = sshll.u32 %s1818_s2, 4  ;;  %s156_s22 = int_to_ptr.hbm [resolvable:$true] %s155_s22 }
   0x6   : > { %p138_p3 = pnand %p1056_p1, %p137_p2  ;;  %s1356_s23 = smov [#allocation4]  }
   0x7   : > { %s157_s24 = sshll.u32 %s1356_s23, 4  ;;  %s158_s24 = int_to_ptr.vmem [resolvable:$true] %s157_s24 }
   0x8   : > { %p1266_p5 = pneg %p138_p3  ;;  %173 = sbr.rel (%p138_p3) target bundleno = 943 (0x3af), region = 36 }
   0xa   : > { %p1267_p6 = pnand %p1270_p4, %p1266_p5 }
   0xc   : > { %1269 = dma.hbm_to_vmem [thread:$0]  (!%p1267_p6), %s156_s22, 64, %s158_s24, [#allocation5]  }
   0xd   : > { %1341 = dma.done.wait (%p1270_p4), [#allocation5], 64  }
   0xe   : > { %1343 = vsyncadd (%p1270_p4), [#allocation5], 4294967232  ;;  %p191_p7 = scmp.eq.s32.totalorder %s1346_s15, 0 }
   0xf   : > { %v213_v0 = vld [vmem:[#allocation4] sm:$0xf] (%p191_p7)  ;;  %vm279_vm0 = vcmask (%p191_p7), 1043456   ;;  %v1211_v3 = vld [vmem:[%s1816_s0 + $0x10] sm:$0xff] (%p191_p7)  ;;  %vm254_vm1 = vcmask (%p191_p7), 64512   ;;  %v1210_v6 = vld [vmem:[%s1816_s0 + $0x8] sm:$0xff] (%p191_p7) }
  0x10   : > { %196 = sbr.rel (!%p191_p7) target bundleno = 179 (0xb3), region = 44  ;;  %v281_v1 = vsel (%p191_p7), %vm279_vm0, %v213_v0, 0  ;;  %v1209_v2 = vld [vmem:[%s1816_s0] sm:$0xff] (%p191_p7)  ;;  %v1215_v5 = vld [vmem:[%s1816_s0 + $0x30] sm:$0xff] (%p191_p7)  ;;  %v1212_v7 = vld [vmem:[%s1816_s0 + $0x18] sm:$0xff] (%p191_p7)  ;;  %vm332_vm2 = vcmask (%p191_p7), 261120  }
  0x11   : > { %290 = vmatpush.bf16.msra.mxu0 (%p191_p7), %v281_v1  ;;  %1239 = vmatpush.bf16.msra.mxu1 (%p191_p7), %v281_v1  ;;  %v1213_v4 = vld [vmem:[%s1816_s0 + $0x20] sm:$0xff] (%p191_p7)  ;;  %v1214_v8 = vld [vmem:[%s1816_s0 + $0x28] sm:$0xff] (%p191_p7)  ;;  %v1216_v9 = vld [vmem:[%s1816_s0 + $0x38] sm:$0xff] (%p191_p7)  ;;  %v1357_v12 = vmov (%p191_p7), 0.0  }
  0x12   : > { %1240 = vmatpush.bf16.msra.mxu2 (%p191_p7), %v281_v1  ;;  %1241 = vmatpush.bf16.msra.mxu3 (%p191_p7), %v281_v1  ;;  %349 = vst [vmem:[%s1820_s4] sm:$0xff] (%p191_p7), %v1357_v12 }
  0x13   : > { %350 = vst [vmem:[%s1820_s4 + $0x8] sm:$0xff] (%p191_p7), %v1357_v12 }
  0x14   : > { %1093 = vmatmul.msk.bf16.vlgmr.msra.gmra.mxu0 (%p191_p7), %vm254_vm1, %v1209_v2  ;;  %1095 = vmatmul.msk.bf16.vlgmr.msra.gmra.mxu1 (%p191_p7), %vm254_vm1, %v1211_v3  ;;  %351 = vst [vmem:[%s1820_s4 + $0x10] sm:$0xff] (%p191_p7), %v1357_v12 }
  0x15   : > { %1097 = vmatmul.msk.bf16.vlgmr.msra.gmra.mxu2 %vm254_vm1, %v1213_v4  ;;  %1099 = vmatmul.msk.bf16.vlgmr.msra.gmra.mxu3 %vm254_vm1, %v1215_v5  ;;  %352 = vst [vmem:[%s1820_s4 + $0x18] sm:$0xff] %v1357_v12 }
  0x16   : > { %353 = vst [vmem:[%s1820_s4 + $0x20] sm:$0xff] %v1357_v12 }
  0x17   : > { %354 = vst [vmem:[%s1820_s4 + $0x28] sm:$0xff] %v1357_v12 }
  0x18   : > { %355 = vst [vmem:[%s1820_s4 + $0x30] sm:$0xff] %v1357_v12 }
  0x19   : > { %356 = vst [vmem:[%s1820_s4 + $0x38] sm:$0xff] %v1357_v12 }
  0x1a   : > { %357 = vst [vmem:[%s1820_s4 + $0x40] sm:$0xff] %v1357_v12 }
  0x1b   : > { %358 = vst [vmem:[%s1820_s4 + $0x48] sm:$0xff] %v1357_v12 }
  0x1c   : > { %359 = vst [vmem:[%s1820_s4 + $0x50] sm:$0xff] %v1357_v12 }
  0x1d   : > { %360 = vst [vmem:[%s1820_s4 + $0x58] sm:$0xff] %v1357_v12 }
  0x1e   : > { %361 = vst [vmem:[%s1820_s4 + $0x60] sm:$0xff] %v1357_v12 }
  0x1f   : > { %362 = vst [vmem:[%s1820_s4 + $0x68] sm:$0xff] %v1357_v12 }
  0x20   : > { %363 = vst [vmem:[%s1820_s4 + $0x70] sm:$0xff] %v1357_v12 }
  0x21   : > { %364 = vst [vmem:[%s1820_s4 + $0x78] sm:$0xff] %v1357_v12 }
  0x24   : > { %1094 = vmatmul.msk.bf16.gmra.mxu0 %vm254_vm1, %v1210_v6  ;;  %1096 = vmatmul.msk.bf16.gmra.mxu1 %vm254_vm1, %v1212_v7 }
  0x25   : > { %1098 = vmatmul.msk.bf16.gmra.mxu2 %vm254_vm1, %v1214_v8  ;;  %1100 = vmatmul.msk.bf16.gmra.mxu3 %vm254_vm1, %v1216_v9 }
  0x91   : > { %v292_v10 = vpop.f32.mrf.mxu0  ;;  %v302_v11 = vpop.f32.mrf.mxu1 }
  0x92   : > { %333 = vst.msk [vmem:[#allocation2] sm:$0xff] %vm332_vm2, %v292_v10 }
  0x93   : > { %337 = vst.msk [vmem:[#allocation2 + $0x20] sm:$0xff] %vm332_vm2, %v302_v11 }
  0x98   : > { %v312_v13 = vpop.f32.mrf.mxu2  ;;  %v322_v14 = vpop.f32.mrf.mxu3 }
  0x99   : > { %341 = vst.msk [vmem:[#allocation2 + $0x40] sm:$0xff] %vm332_vm2, %v312_v13  ;;  %v294_v15 = vpop.f32.mrf.mxu0  ;;  %v304_v16 = vpop.f32.mrf.mxu1 }
  0x9a   : > { %345 = vst.msk [vmem:[#allocation2 + $0x60] sm:$0xff] %vm332_vm2, %v322_v14 }
  0x9b   : > { %334 = vst.msk [vmem:[#allocation2 + $0x8] sm:$0xff] %vm332_vm2, %v294_v15 }
  0x9c   : > { %338 = vst.msk [vmem:[#allocation2 + $0x28] sm:$0xff] %vm332_vm2, %v304_v16 }
  0xa0   : > { %v314_v17 = vpop.f32.mrf.mxu2  ;;  %v324_v18 = vpop.f32.mrf.mxu3 }
  0xa1   : > { %342 = vst.msk [vmem:[#allocation2 + $0x48] sm:$0xff] %vm332_vm2, %v314_v17  ;;  %v297_v19 = vpop.f32.mrf.mxu0  ;;  %v307_v20 = vpop.f32.mrf.mxu1 }
  0xa2   : > { %346 = vst.msk [vmem:[#allocation2 + $0x68] sm:$0xff] %vm332_vm2, %v324_v18 }
  0xa3   : > { %335 = vst.msk [vmem:[#allocation2 + $0x10] sm:$0xff] %vm332_vm2, %v297_v19 }
  0xa4   : > { %339 = vst.msk [vmem:[#allocation2 + $0x30] sm:$0xff] %vm332_vm2, %v307_v20 }
  0xa8   : > { %v317_v21 = vpop.f32.mrf.mxu2  ;;  %v327_v22 = vpop.f32.mrf.mxu3 }
  0xa9   : > { %343 = vst.msk [vmem:[#allocation2 + $0x50] sm:$0xff] %vm332_vm2, %v317_v21  ;;  %v299_v23 = vpop.f32.mrf.mxu0  ;;  %v309_v24 = vpop.f32.mrf.mxu1 }
  0xaa   : > { %347 = vst.msk [vmem:[#allocation2 + $0x70] sm:$0xff] %vm332_vm2, %v327_v22 }
  0xab   : > { %336 = vst.msk [vmem:[#allocation2 + $0x18] sm:$0xff] %vm332_vm2, %v299_v23 }
  0xac   : > { %340 = vst.msk [vmem:[#allocation2 + $0x38] sm:$0xff] %vm332_vm2, %v309_v24 }
  0xb0   : > { %v319_v25 = vpop.f32.mrf.mxu2  ;;  %v329_v26 = vpop.f32.mrf.mxu3 }
  0xb1   : > { %344 = vst.msk [vmem:[#allocation2 + $0x58] sm:$0xff] %vm332_vm2, %v319_v25 }
  0xb2   : > { %348 = vst.msk [vmem:[#allocation2 + $0x78] sm:$0xff] %vm332_vm2, %v329_v26 }
  0xb3 PF: > { %p366_p8 = scmp.lt.s32.totalorder %s1346_s15, 0  ;;  %s367_s29 = ssub.s32 0, %s1346_s15 }
  0xb4   : > { %s1101_s30 = smin.u32 %s1346_s15, %s367_s29 }
  0xb5   : > { %s369_s5 = sand.u32 1, %s1101_s30  }
  0xb6   : > { %s370_s6 = ssub.s32 0, %s369_s5 }
  0xb7   : > { %s1826_s6 = smov (!%p366_p8, %s370_s6), %s369_s5 }
  0xb8   : > { %p1103_p9 = scmp.lt.s32.totalorder %s1826_s6, 0  ;;  %s376_s7 = sadd.s32 2, %s1826_s6 }
  0xba   : > { %s1828_s7 = smov (!%p1103_p9, %s376_s7), %s1826_s6 }
  0xbb   : > { %p1104_p10 = scmp.ne.s32.totalorder %s1828_s7, 0 }
  0xbc   : > { %s1225_s28 = sshll.u32 (!%p1104_p10), %s1346_s15, 4 }
  0xbd   : > { %381 = sbr.rel (%p1104_p10) target bundleno = 565 (0x235), region = 48  ;;  %s568_s5 = scalar_lea.vmem (!%p1104_p10), %s1819_s3, %s1225_s28 }
  0xc2   : > { %v416_v27 = vld [vmem:[#allocation2 + $0x70] sm:$0xff]  ;;  %v417_v28 = vld [vmem:[#allocation2 + $0x78] sm:$0xff]  ;;  %v414_v29 = vld [vmem:[#allocation2 + $0x60] sm:$0xff]  ;;  %vm524_vm3 = vcmask 261120  }
  0xc3   : > { %v425_v30 = vpack.c.bf16 %v417_v28, %v416_v27  ;;  %v415_v31 = vld [vmem:[#allocation2 + $0x68] sm:$0xff]  ;;  %v412_v33 = vld [vmem:[#allocation2 + $0x50] sm:$0xff]  ;;  %v413_v34 = vld [vmem:[#allocation2 + $0x58] sm:$0xff] }
  0xc4   : > { %v424_v32 = vpack.c.bf16 %v415_v31, %v414_v29  ;;  %v423_v35 = vpack.c.bf16 %v413_v34, %v412_v33  ;;  %v410_v36 = vld [vmem:[#allocation2 + $0x40] sm:$0xff]  ;;  %v411_v37 = vld [vmem:[#allocation2 + $0x48] sm:$0xff]  ;;  %v408_v39 = vld [vmem:[#allocation2 + $0x30] sm:$0xff] }
  0xc5   : > { %474 = vmatpush.bf16.msra.mxu0 %v425_v30  ;;  %1242 = vmatpush.bf16.msra.mxu2 %v425_v30  ;;  %v422_v38 = vpack.c.bf16 %v411_v37, %v410_v36  ;;  %v409_v40 = vld [vmem:[#allocation2 + $0x38] sm:$0xff]  ;;  %v406_v42 = vld [vmem:[#allocation2 + $0x20] sm:$0xff]  ;;  %v407_v43 = vld [vmem:[#allocation2 + $0x28] sm:$0xff] }
  0xc6   : > { %v421_v41 = vpack.c.bf16 %v409_v40, %v408_v39  ;;  %v420_v44 = vpack.c.bf16 %v407_v43, %v406_v42  ;;  %v404_v45 = vld [vmem:[#allocation2 + $0x10] sm:$0xff]  ;;  %v405_v46 = vld [vmem:[#allocation2 + $0x18] sm:$0xff]  ;;  %v402_v48 = vld [vmem:[#allocation2] sm:$0xff] }
  0xc7   : > { %v419_v47 = vpack.c.bf16 %v405_v46, %v404_v45  ;;  %v403_v49 = vld [vmem:[#allocation2 + $0x8] sm:$0xff]  ;;  %v1217_v51 = vld [vmem:[%s1817_s1] sm:$0xff]  ;;  %v1219_v55 = vld [vmem:[%s1817_s1 + $0x10] sm:$0xff] }
  0xc8   : > { %v418_v50 = vpack.c.bf16 %v403_v49, %v402_v48  ;;  %v1221_v52 = vld [vmem:[%s1817_s1 + $0x20] sm:$0xff]  ;;  %v1218_v53 = vld [vmem:[%s1817_s1 + $0x8] sm:$0xff]  ;;  %v1223_v56 = vld [vmem:[%s1817_s1 + $0x30] sm:$0xff] }
  0xc9   : > { %475 = vmatpush.bf16.msra.mxu0 %v424_v32  ;;  %1243 = vmatpush.bf16.msra.mxu2 %v424_v32  ;;  %v1222_v54 = vld [vmem:[%s1817_s1 + $0x28] sm:$0xff]  ;;  %v1220_v57 = vld [vmem:[%s1817_s1 + $0x18] sm:$0xff]  ;;  %v1226_v60 = vld [vmem:[%s568_s5] sm:$0xff] }
  0xca   : > { %v1224_v58 = vld [vmem:[%s1817_s1 + $0x38] sm:$0xff]  ;;  %v1227_v59 = vld [vmem:[%s568_s5 + $0x8] sm:$0xff]  ;;  %v542_v21 = vld [vmem:[%s1820_s4] sm:$0xff] }
  0xcb   : > { %615 = vmatpush.bf16.msra.mxu1 %v1227_v59  ;;  %1250 = vmatpush.bf16.msra.mxu3 %v1227_v59  ;;  %v543_v24 = vld [vmem:[%s1820_s4 + $0x8] sm:$0xff]  ;;  %v544_v27 = vld [vmem:[%s1820_s4 + $0x10] sm:$0xff]  ;;  %v545_v30 = vld [vmem:[%s1820_s4 + $0x18] sm:$0xff] }
  0xcc   : > { %v552_v33 = vld [vmem:[%s1820_s4 + $0x50] sm:$0xff]  ;;  %v546_v36 = vld [vmem:[%s1820_s4 + $0x20] sm:$0xff]  ;;  %v553_v39 = vld [vmem:[%s1820_s4 + $0x58] sm:$0xff] }
  0xcd   : > { %476 = vmatpush.bf16.msra.mxu0 %v423_v35  ;;  %1244 = vmatpush.bf16.msra.mxu2 %v423_v35  ;;  %v547_v42 = vld [vmem:[%s1820_s4 + $0x28] sm:$0xff]  ;;  %v554_v45 = vld [vmem:[%s1820_s4 + $0x60] sm:$0xff]  ;;  %v548_v48 = vld [vmem:[%s1820_s4 + $0x30] sm:$0xff] }
  0xcf   : > { %616 = vmatpush.bf16.msra.mxu1 %v1226_v60  ;;  %1251 = vmatpush.bf16.msra.mxu3 %v1226_v60  ;;  %v550_v60 = vld [vmem:[%s1820_s4 + $0x40] sm:$0xff] }
  0xd1   : > { %477 = vmatpush.bf16.msra.mxu0 %v422_v38  ;;  %1245 = vmatpush.bf16.msra.mxu2 %v422_v38 }
  0xd5   : > { %478 = vmatpush.bf16.msra.mxu0 %v421_v41  ;;  %1246 = vmatpush.bf16.msra.mxu2 %v421_v41 }
  0xd9   : > { %479 = vmatpush.bf16.msra.mxu0 %v420_v44  ;;  %1247 = vmatpush.bf16.msra.mxu2 %v420_v44 }
  0xdd   : > { %480 = vmatpush.bf16.msra.mxu0 %v419_v47  ;;  %1248 = vmatpush.bf16.msra.mxu2 %v419_v47 }
  0xe1   : > { %481 = vmatpush.bf16.msra.mxu0 %v418_v50  ;;  %1249 = vmatpush.bf16.msra.mxu2 %v418_v50 }
  0xe4   : > { %482 = vmatmul.bf16.vlgmr.msra.gmra.mxu0 %v1217_v51  ;;  %502 = vmatmul.bf16.vlgmr.msra.gmra.mxu2 %v1221_v52  ;;  %v555_v51 = vld [vmem:[%s1820_s4 + $0x68] sm:$0xff] }
  0xf4   : > { %487 = vmatmul.bf16.gmra.mxu0 %v1218_v53  ;;  %507 = vmatmul.bf16.gmra.mxu2 %v1222_v54  ;;  %v549_v54 = vld [vmem:[%s1820_s4 + $0x38] sm:$0xff] }
 0x104   : > { %492 = vmatmul.bf16.gmra.mxu0 %v1219_v55  ;;  %512 = vmatmul.bf16.gmra.mxu2 %v1223_v56 }
 0x114   : > { %497 = vmatmul.bf16.gmra.mxu0 %v1220_v57  ;;  %517 = vmatmul.bf16.gmra.mxu2 %v1224_v58  ;;  %v556_v57 = vld [vmem:[%s1820_s4 + $0x70] sm:$0xff] }
 0x161   : > { %v483_v61 = vpop.f32.mrf.mxu0 }
 0x162   : > { %525 = vst.msk [vmem:[#allocation3] sm:$0xff] %vm524_vm3, %v483_v61 }
 0x167   : > { %v503_v62 = vpop.f32.mrf.mxu2 }
 0x168   : > { %533 = vst.msk [vmem:[#allocation3 + $0x40] sm:$0xff] %vm524_vm3, %v503_v62 }
 0x169   : > { %v485_v63 = vpop.f32.mrf.mxu0 }
 0x16a   : > { %526 = vst.msk [vmem:[#allocation3 + $0x8] sm:$0xff] %vm524_vm3, %v485_v63  ;;  %v558_v0 = vpack.c.bf16 %v485_v63, %v483_v61  ;;  %v557_v63 = vld [vmem:[%s1820_s4 + $0x78] sm:$0xff] }
 0x16c   : > { %1147 = vmatmul.msk.bf16.vlgmr.msra.gmra.mxu1 %vm524_vm3, %v558_v0 }
 0x16f   : > { %v505_v1 = vpop.f32.mrf.mxu2 }
 0x170   : > { %534 = vst.msk [vmem:[#allocation3 + $0x48] sm:$0xff] %vm524_vm3, %v505_v1  ;;  %v562_v20 = vpack.c.bf16 %v505_v1, %v503_v62 }
 0x171   : > { %v488_v2 = vpop.f32.mrf.mxu0 }
 0x172   : > { %527 = vst.msk [vmem:[#allocation3 + $0x10] sm:$0xff] %vm524_vm3, %v488_v2 }
 0x177   : > { %v508_v3 = vpop.f32.mrf.mxu2 }
 0x178   : > { %535 = vst.msk [vmem:[#allocation3 + $0x50] sm:$0xff] %vm524_vm3, %v508_v3 }
 0x179   : > { %v490_v4 = vpop.f32.mrf.mxu0 }
 0x17a   : > { %528 = vst.msk [vmem:[#allocation3 + $0x18] sm:$0xff] %vm524_vm3, %v490_v4  ;;  %v559_v5 = vpack.c.bf16 %v490_v4, %v488_v2  ;;  %v551_v2 = vld [vmem:[%s1820_s4 + $0x48] sm:$0xff] }
 0x17c   : > { %1148 = vmatmul.msk.bf16.gmra.mxu1 %vm524_vm3, %v559_v5 }
 0x17f   : > { %v510_v6 = vpop.f32.mrf.mxu2 }
 0x180   : > { %536 = vst.msk [vmem:[#allocation3 + $0x58] sm:$0xff] %vm524_vm3, %v510_v6  ;;  %v563_v7 = vpack.c.bf16 %v510_v6, %v508_v3 }
 0x181   : > { %v493_v8 = vpop.f32.mrf.mxu0 }
 0x182   : > { %529 = vst.msk [vmem:[#allocation3 + $0x20] sm:$0xff] %vm524_vm3, %v493_v8  ;;  %1152 = vmatmul.msk.bf16.vlgmr.msra.gmra.mxu3 %vm524_vm3, %v563_v7 }
 0x187   : > { %v513_v9 = vpop.f32.mrf.mxu2 }
 0x188   : > { %537 = vst.msk [vmem:[#allocation3 + $0x60] sm:$0xff] %vm524_vm3, %v513_v9 }
 0x189   : > { %v495_v10 = vpop.f32.mrf.mxu0 }
 0x18a   : > { %530 = vst.msk [vmem:[#allocation3 + $0x28] sm:$0xff] %vm524_vm3, %v495_v10  ;;  %v560_v11 = vpack.c.bf16 %v495_v10, %v493_v8 }
 0x18c   : > { %1149 = vmatmul.msk.bf16.gmra.mxu1 %vm524_vm3, %v560_v11 }
 0x18f   : > { %v515_v12 = vpop.f32.mrf.mxu2 }
 0x190   : > { %538 = vst.msk [vmem:[#allocation3 + $0x68] sm:$0xff] %vm524_vm3, %v515_v12  ;;  %v564_v13 = vpack.c.bf16 %v515_v12, %v513_v9 }
 0x191   : > { %v498_v14 = vpop.f32.mrf.mxu0 }
 0x192   : > { %531 = vst.msk [vmem:[#allocation3 + $0x30] sm:$0xff] %vm524_vm3, %v498_v14  ;;  %1153 = vmatmul.msk.bf16.gmra.mxu3 %vm524_vm3, %v564_v13 }
 0x197   : > { %v518_v15 = vpop.f32.mrf.mxu2 }
 0x198   : > { %539 = vst.msk [vmem:[#allocation3 + $0x70] sm:$0xff] %vm524_vm3, %v518_v15 }
 0x199   : > { %v500_v16 = vpop.f32.mrf.mxu0 }
 0x19a   : > { %532 = vst.msk [vmem:[#allocation3 + $0x38] sm:$0xff] %vm524_vm3, %v500_v16  ;;  %v561_v17 = vpack.c.bf16 %v500_v16, %v498_v14 }
 0x19c   : > { %1150 = vmatmul.msk.bf16.gmra.mxu1 %vm524_vm3, %v561_v17 }
 0x19f   : > { %v520_v18 = vpop.f32.mrf.mxu2 }
 0x1a0   : > { %540 = vst.msk [vmem:[#allocation3 + $0x78] sm:$0xff] %vm524_vm3, %v520_v18  ;;  %v565_v19 = vpack.c.bf16 %v520_v18, %v518_v15 }
 0x1a2   : > { %1154 = vmatmul.msk.bf16.gmra.mxu3 %vm524_vm3, %v565_v19 }
 0x1ac   : > { %1151 = vmatmul.msk.bf16.gmra.mxu1 %vm524_vm3, %v562_v20 }
 0x1e9   : > { %v618_v22 = vpop.f32.mrf.mxu1 }
 0x1ea   : > { %v658_v23 = vadd.f32 %v618_v22, %v542_v21 }
 0x1ec   : > { %674 = vst [vmem:[%s1820_s4] sm:$0xff] %v658_v23 }
 0x1f1   : > { %v620_v25 = vpop.f32.mrf.mxu1 }
 0x1f2   : > { %v659_v26 = vadd.f32 %v620_v25, %v543_v24 }
 0x1f4   : > { %675 = vst [vmem:[%s1820_s4 + $0x8] sm:$0xff] %v659_v26 }
 0x1f9   : > { %v623_v28 = vpop.f32.mrf.mxu1 }
 0x1fa   : > { %v660_v29 = vadd.f32 %v623_v28, %v544_v27 }
 0x1fc   : > { %676 = vst [vmem:[%s1820_s4 + $0x10] sm:$0xff] %v660_v29 }
 0x201   : > { %v625_v31 = vpop.f32.mrf.mxu1 }
 0x202   : > { %v661_v32 = vadd.f32 %v625_v31, %v545_v30 }
 0x204   : > { %677 = vst [vmem:[%s1820_s4 + $0x18] sm:$0xff] %v661_v32 }
 0x205   : > { %v643_v34 = vpop.f32.mrf.mxu3 }
 0x206   : > { %v668_v35 = vadd.f32 %v643_v34, %v552_v33 }
 0x208   : > { %684 = vst [vmem:[%s1820_s4 + $0x50] sm:$0xff] %v668_v35 }
 0x209   : > { %v628_v37 = vpop.f32.mrf.mxu1 }
 0x20a   : > { %v662_v38 = vadd.f32 %v628_v37, %v546_v36 }
 0x20c   : > { %678 = vst [vmem:[%s1820_s4 + $0x20] sm:$0xff] %v662_v38 }
 0x20d   : > { %v645_v40 = vpop.f32.mrf.mxu3 }
 0x20e   : > { %v669_v41 = vadd.f32 %v645_v40, %v553_v39 }
 0x210   : > { %685 = vst [vmem:[%s1820_s4 + $0x58] sm:$0xff] %v669_v41 }
 0x211   : > { %v630_v43 = vpop.f32.mrf.mxu1 }
 0x212   : > { %v663_v44 = vadd.f32 %v630_v43, %v547_v42 }
 0x214   : > { %679 = vst [vmem:[%s1820_s4 + $0x28] sm:$0xff] %v663_v44 }
 0x215   : > { %v648_v46 = vpop.f32.mrf.mxu3 }
 0x216   : > { %v670_v47 = vadd.f32 %v648_v46, %v554_v45 }
 0x218   : > { %686 = vst [vmem:[%s1820_s4 + $0x60] sm:$0xff] %v670_v47 }
 0x219   : > { %v633_v49 = vpop.f32.mrf.mxu1 }
 0x21a   : > { %v664_v50 = vadd.f32 %v633_v49, %v548_v48 }
 0x21c   : > { %680 = vst [vmem:[%s1820_s4 + $0x30] sm:$0xff] %v664_v50 }
 0x21d   : > { %v650_v52 = vpop.f32.mrf.mxu3 }
 0x21e   : > { %v671_v53 = vadd.f32 %v650_v52, %v555_v51 }
 0x220   : > { %687 = vst [vmem:[%s1820_s4 + $0x68] sm:$0xff] %v671_v53 }
 0x221   : > { %v635_v55 = vpop.f32.mrf.mxu1 }
 0x222   : > { %v665_v56 = vadd.f32 %v635_v55, %v549_v54 }
 0x224   : > { %681 = vst [vmem:[%s1820_s4 + $0x38] sm:$0xff] %v665_v56 }
 0x225   : > { %v653_v58 = vpop.f32.mrf.mxu3 }
 0x226   : > { %v672_v59 = vadd.f32 %v653_v58, %v556_v57 }
 0x228   : > { %688 = vst [vmem:[%s1820_s4 + $0x70] sm:$0xff] %v672_v59 }
 0x229   : > { %v638_v61 = vpop.f32.mrf.mxu1 }
 0x22a   : > { %v666_v62 = vadd.f32 %v638_v61, %v550_v60 }
 0x22c   : > { %682 = vst [vmem:[%s1820_s4 + $0x40] sm:$0xff] %v666_v62 }
 0x22d   : > { %v655_v0 = vpop.f32.mrf.mxu3 }
 0x22e   : > { %v673_v1 = vadd.f32 %v655_v0, %v557_v63 }
 0x230   : > { %689 = vst [vmem:[%s1820_s4 + $0x78] sm:$0xff] %v673_v1 }
 0x231   : > { %v640_v3 = vpop.f32.mrf.mxu1 }
 0x232   : > { %v667_v4 = vadd.f32 %v640_v3, %v551_v2 }
 0x234   : > { %683 = vst [vmem:[%s1820_s4 + $0x48] sm:$0xff] %v667_v4 }
 0x235 PF: > { %p1155_p11 = scmp.ne.s32.totalorder %s1828_s7, 1 }
 0x236   : > { %s1236_s27 = sshll.u32 (!%p1155_p11), %s1346_s15, 4 }
 0x237   : > { %693 = sbr.rel (%p1155_p11) target bundleno = 943 (0x3af), region = 52  ;;  %s880_s30 = scalar_lea.vmem (!%p1155_p11), %s1819_s3, %s1236_s27 }
 0x23c   : > { %v728_v5 = vld [vmem:[#allocation3 + $0x70] sm:$0xff]  ;;  %v729_v6 = vld [vmem:[#allocation3 + $0x78] sm:$0xff]  ;;  %v726_v7 = vld [vmem:[#allocation3 + $0x60] sm:$0xff]  ;;  %vm836_vm4 = vcmask 261120  }
 0x23d   : > { %v737_v8 = vpack.c.bf16 %v729_v6, %v728_v5  ;;  %v727_v9 = vld [vmem:[#allocation3 + $0x68] sm:$0xff]  ;;  %v724_v11 = vld [vmem:[#allocation3 + $0x50] sm:$0xff]  ;;  %v725_v12 = vld [vmem:[#allocation3 + $0x58] sm:$0xff] }
 0x23e   : > { %v736_v10 = vpack.c.bf16 %v727_v9, %v726_v7  ;;  %v735_v13 = vpack.c.bf16 %v725_v12, %v724_v11  ;;  %v722_v14 = vld [vmem:[#allocation3 + $0x40] sm:$0xff]  ;;  %v723_v15 = vld [vmem:[#allocation3 + $0x48] sm:$0xff]  ;;  %v720_v17 = vld [vmem:[#allocation3 + $0x30] sm:$0xff] }
 0x23f   : > { %786 = vmatpush.bf16.msra.mxu0 %v737_v8  ;;  %1252 = vmatpush.bf16.msra.mxu2 %v737_v8  ;;  %v734_v16 = vpack.c.bf16 %v723_v15, %v722_v14  ;;  %v721_v18 = vld [vmem:[#allocation3 + $0x38] sm:$0xff]  ;;  %v718_v20 = vld [vmem:[#allocation3 + $0x20] sm:$0xff]  ;;  %v719_v21 = vld [vmem:[#allocation3 + $0x28] sm:$0xff] }
 0x240   : > { %v733_v19 = vpack.c.bf16 %v721_v18, %v720_v17  ;;  %v732_v22 = vpack.c.bf16 %v719_v21, %v718_v20  ;;  %v716_v23 = vld [vmem:[#allocation3 + $0x10] sm:$0xff]  ;;  %v717_v24 = vld [vmem:[#allocation3 + $0x18] sm:$0xff]  ;;  %v714_v26 = vld [vmem:[#allocation3] sm:$0xff] }
 0x241   : > { %v731_v25 = vpack.c.bf16 %v717_v24, %v716_v23  ;;  %v715_v27 = vld [vmem:[#allocation3 + $0x8] sm:$0xff]  ;;  %v1228_v29 = vld [vmem:[%s1817_s1] sm:$0xff]  ;;  %v1230_v33 = vld [vmem:[%s1817_s1 + $0x10] sm:$0xff] }
 0x242   : > { %v730_v28 = vpack.c.bf16 %v715_v27, %v714_v26  ;;  %v1232_v30 = vld [vmem:[%s1817_s1 + $0x20] sm:$0xff]  ;;  %v1229_v31 = vld [vmem:[%s1817_s1 + $0x8] sm:$0xff]  ;;  %v1234_v34 = vld [vmem:[%s1817_s1 + $0x30] sm:$0xff] }
 0x243   : > { %787 = vmatpush.bf16.msra.mxu0 %v736_v10  ;;  %1253 = vmatpush.bf16.msra.mxu2 %v736_v10  ;;  %v1233_v32 = vld [vmem:[%s1817_s1 + $0x28] sm:$0xff]  ;;  %v1231_v35 = vld [vmem:[%s1817_s1 + $0x18] sm:$0xff]  ;;  %v1237_v38 = vld [vmem:[%s880_s30] sm:$0xff] }
 0x244   : > { %v1235_v36 = vld [vmem:[%s1817_s1 + $0x38] sm:$0xff]  ;;  %v1238_v37 = vld [vmem:[%s880_s30 + $0x8] sm:$0xff]  ;;  %v854_v63 = vld [vmem:[%s1820_s4] sm:$0xff] }
 0x245   : > { %927 = vmatpush.bf16.msra.mxu1 %v1238_v37  ;;  %1260 = vmatpush.bf16.msra.mxu3 %v1238_v37  ;;  %v855_v2 = vld [vmem:[%s1820_s4 + $0x8] sm:$0xff]  ;;  %v856_v5 = vld [vmem:[%s1820_s4 + $0x10] sm:$0xff]  ;;  %v857_v8 = vld [vmem:[%s1820_s4 + $0x18] sm:$0xff] }
 0x246   : > { %v864_v11 = vld [vmem:[%s1820_s4 + $0x50] sm:$0xff]  ;;  %v858_v14 = vld [vmem:[%s1820_s4 + $0x20] sm:$0xff]  ;;  %v865_v17 = vld [vmem:[%s1820_s4 + $0x58] sm:$0xff] }
 0x247   : > { %788 = vmatpush.bf16.msra.mxu0 %v735_v13  ;;  %1254 = vmatpush.bf16.msra.mxu2 %v735_v13  ;;  %v859_v20 = vld [vmem:[%s1820_s4 + $0x28] sm:$0xff]  ;;  %v866_v23 = vld [vmem:[%s1820_s4 + $0x60] sm:$0xff]  ;;  %v860_v26 = vld [vmem:[%s1820_s4 + $0x30] sm:$0xff] }
 0x249   : > { %928 = vmatpush.bf16.msra.mxu1 %v1237_v38  ;;  %1261 = vmatpush.bf16.msra.mxu3 %v1237_v38  ;;  %v862_v38 = vld [vmem:[%s1820_s4 + $0x40] sm:$0xff] }
 0x24b   : > { %789 = vmatpush.bf16.msra.mxu0 %v734_v16  ;;  %1255 = vmatpush.bf16.msra.mxu2 %v734_v16 }
 0x24f   : > { %790 = vmatpush.bf16.msra.mxu0 %v733_v19  ;;  %1256 = vmatpush.bf16.msra.mxu2 %v733_v19 }
 0x253   : > { %791 = vmatpush.bf16.msra.mxu0 %v732_v22  ;;  %1257 = vmatpush.bf16.msra.mxu2 %v732_v22 }
 0x257   : > { %792 = vmatpush.bf16.msra.mxu0 %v731_v25  ;;  %1258 = vmatpush.bf16.msra.mxu2 %v731_v25 }
 0x25b   : > { %793 = vmatpush.bf16.msra.mxu0 %v730_v28  ;;  %1259 = vmatpush.bf16.msra.mxu2 %v730_v28 }
 0x25e   : > { %794 = vmatmul.bf16.vlgmr.msra.gmra.mxu0 %v1228_v29  ;;  %814 = vmatmul.bf16.vlgmr.msra.gmra.mxu2 %v1232_v30  ;;  %v867_v29 = vld [vmem:[%s1820_s4 + $0x68] sm:$0xff] }
 0x26e   : > { %799 = vmatmul.bf16.gmra.mxu0 %v1229_v31  ;;  %819 = vmatmul.bf16.gmra.mxu2 %v1233_v32  ;;  %v861_v32 = vld [vmem:[%s1820_s4 + $0x38] sm:$0xff] }
 0x27e   : > { %804 = vmatmul.bf16.gmra.mxu0 %v1230_v33  ;;  %824 = vmatmul.bf16.gmra.mxu2 %v1234_v34 }
 0x28e   : > { %809 = vmatmul.bf16.gmra.mxu0 %v1231_v35  ;;  %829 = vmatmul.bf16.gmra.mxu2 %v1235_v36  ;;  %v868_v35 = vld [vmem:[%s1820_s4 + $0x70] sm:$0xff] }
 0x2db   : > { %v795_v39 = vpop.f32.mrf.mxu0 }
 0x2dc   : > { %837 = vst.msk [vmem:[#allocation2] sm:$0xff] %vm836_vm4, %v795_v39 }
 0x2e1   : > { %v815_v40 = vpop.f32.mrf.mxu2 }
 0x2e2   : > { %845 = vst.msk [vmem:[#allocation2 + $0x40] sm:$0xff] %vm836_vm4, %v815_v40 }
 0x2e3   : > { %v797_v41 = vpop.f32.mrf.mxu0 }
 0x2e4   : > { %838 = vst.msk [vmem:[#allocation2 + $0x8] sm:$0xff] %vm836_vm4, %v797_v41  ;;  %v870_v42 = vpack.c.bf16 %v797_v41, %v795_v39  ;;  %v869_v41 = vld [vmem:[%s1820_s4 + $0x78] sm:$0xff] }
 0x2e6   : > { %1198 = vmatmul.msk.bf16.vlgmr.msra.gmra.mxu1 %vm836_vm4, %v870_v42 }
 0x2e9   : > { %v817_v43 = vpop.f32.mrf.mxu2 }
 0x2ea   : > { %846 = vst.msk [vmem:[#allocation2 + $0x48] sm:$0xff] %vm836_vm4, %v817_v43  ;;  %v874_v62 = vpack.c.bf16 %v817_v43, %v815_v40 }
 0x2eb   : > { %v800_v44 = vpop.f32.mrf.mxu0 }
 0x2ec   : > { %839 = vst.msk [vmem:[#allocation2 + $0x10] sm:$0xff] %vm836_vm4, %v800_v44 }
 0x2f1   : > { %v820_v45 = vpop.f32.mrf.mxu2 }
 0x2f2   : > { %847 = vst.msk [vmem:[#allocation2 + $0x50] sm:$0xff] %vm836_vm4, %v820_v45 }
 0x2f3   : > { %v802_v46 = vpop.f32.mrf.mxu0 }
 0x2f4   : > { %840 = vst.msk [vmem:[#allocation2 + $0x18] sm:$0xff] %vm836_vm4, %v802_v46  ;;  %v871_v47 = vpack.c.bf16 %v802_v46, %v800_v44  ;;  %v863_v44 = vld [vmem:[%s1820_s4 + $0x48] sm:$0xff] }
 0x2f6   : > { %1199 = vmatmul.msk.bf16.gmra.mxu1 %vm836_vm4, %v871_v47 }
 0x2f9   : > { %v822_v48 = vpop.f32.mrf.mxu2 }
 0x2fa   : > { %848 = vst.msk [vmem:[#allocation2 + $0x58] sm:$0xff] %vm836_vm4, %v822_v48  ;;  %v875_v49 = vpack.c.bf16 %v822_v48, %v820_v45 }
 0x2fb   : > { %v805_v50 = vpop.f32.mrf.mxu0 }
 0x2fc   : > { %841 = vst.msk [vmem:[#allocation2 + $0x20] sm:$0xff] %vm836_vm4, %v805_v50  ;;  %1203 = vmatmul.msk.bf16.vlgmr.msra.gmra.mxu3 %vm836_vm4, %v875_v49 }
 0x301   : > { %v825_v51 = vpop.f32.mrf.mxu2 }
 0x302   : > { %849 = vst.msk [vmem:[#allocation2 + $0x60] sm:$0xff] %vm836_vm4, %v825_v51 }
 0x303   : > { %v807_v52 = vpop.f32.mrf.mxu0 }
 0x304   : > { %842 = vst.msk [vmem:[#allocation2 + $0x28] sm:$0xff] %vm836_vm4, %v807_v52  ;;  %v872_v53 = vpack.c.bf16 %v807_v52, %v805_v50 }
 0x306   : > { %1200 = vmatmul.msk.bf16.gmra.mxu1 %vm836_vm4, %v872_v53 }
 0x309   : > { %v827_v54 = vpop.f32.mrf.mxu2 }
 0x30a   : > { %850 = vst.msk [vmem:[#allocation2 + $0x68] sm:$0xff] %vm836_vm4, %v827_v54  ;;  %v876_v55 = vpack.c.bf16 %v827_v54, %v825_v51 }
 0x30b   : > { %v810_v56 = vpop.f32.mrf.mxu0 }
 0x30c   : > { %843 = vst.msk [vmem:[#allocation2 + $0x30] sm:$0xff] %vm836_vm4, %v810_v56  ;;  %1204 = vmatmul.msk.bf16.gmra.mxu3 %vm836_vm4, %v876_v55 }
 0x311   : > { %v830_v57 = vpop.f32.mrf.mxu2 }
 0x312   : > { %851 = vst.msk [vmem:[#allocation2 + $0x70] sm:$0xff] %vm836_vm4, %v830_v57 }
 0x313   : > { %v812_v58 = vpop.f32.mrf.mxu0 }
 0x314   : > { %844 = vst.msk [vmem:[#allocation2 + $0x38] sm:$0xff] %vm836_vm4, %v812_v58  ;;  %v873_v59 = vpack.c.bf16 %v812_v58, %v810_v56 }
 0x316   : > { %1201 = vmatmul.msk.bf16.gmra.mxu1 %vm836_vm4, %v873_v59 }
 0x319   : > { %v832_v60 = vpop.f32.mrf.mxu2 }
 0x31a   : > { %852 = vst.msk [vmem:[#allocation2 + $0x78] sm:$0xff] %vm836_vm4, %v832_v60  ;;  %v877_v61 = vpack.c.bf16 %v832_v60, %v830_v57 }
 0x31c   : > { %1205 = vmatmul.msk.bf16.gmra.mxu3 %vm836_vm4, %v877_v61 }
 0x326   : > { %1202 = vmatmul.msk.bf16.gmra.mxu1 %vm836_vm4, %v874_v62 }
 0x363   : > { %v930_v0 = vpop.f32.mrf.mxu1 }
 0x364   : > { %v970_v1 = vadd.f32 %v930_v0, %v854_v63 }
 0x366   : > { %986 = vst [vmem:[%s1820_s4] sm:$0xff] %v970_v1 }
 0x36b   : > { %v932_v3 = vpop.f32.mrf.mxu1 }
 0x36c   : > { %v971_v4 = vadd.f32 %v932_v3, %v855_v2 }
 0x36e   : > { %987 = vst [vmem:[%s1820_s4 + $0x8] sm:$0xff] %v971_v4 }
 0x373   : > { %v935_v6 = vpop.f32.mrf.mxu1 }
 0x374   : > { %v972_v7 = vadd.f32 %v935_v6, %v856_v5 }
 0x376   : > { %988 = vst [vmem:[%s1820_s4 + $0x10] sm:$0xff] %v972_v7 }
 0x37b   : > { %v937_v9 = vpop.f32.mrf.mxu1 }
 0x37c   : > { %v973_v10 = vadd.f32 %v937_v9, %v857_v8 }
 0x37e   : > { %989 = vst [vmem:[%s1820_s4 + $0x18] sm:$0xff] %v973_v10 }
 0x37f   : > { %v955_v12 = vpop.f32.mrf.mxu3 }
 0x380   : > { %v980_v13 = vadd.f32 %v955_v12, %v864_v11 }
 0x382   : > { %996 = vst [vmem:[%s1820_s4 + $0x50] sm:$0xff] %v980_v13 }
 0x383   : > { %v940_v15 = vpop.f32.mrf.mxu1 }
 0x384   : > { %v974_v16 = vadd.f32 %v940_v15, %v858_v14 }
 0x386   : > { %990 = vst [vmem:[%s1820_s4 + $0x20] sm:$0xff] %v974_v16 }
 0x387   : > { %v957_v18 = vpop.f32.mrf.mxu3 }
 0x388   : > { %v981_v19 = vadd.f32 %v957_v18, %v865_v17 }
 0x38a   : > { %997 = vst [vmem:[%s1820_s4 + $0x58] sm:$0xff] %v981_v19 }
 0x38b   : > { %v942_v21 = vpop.f32.mrf.mxu1 }
 0x38c   : > { %v975_v22 = vadd.f32 %v942_v21, %v859_v20 }
 0x38e   : > { %991 = vst [vmem:[%s1820_s4 + $0x28] sm:$0xff] %v975_v22 }
 0x38f   : > { %v960_v24 = vpop.f32.mrf.mxu3 }
 0x390   : > { %v982_v25 = vadd.f32 %v960_v24, %v866_v23 }
 0x392   : > { %998 = vst [vmem:[%s1820_s4 + $0x60] sm:$0xff] %v982_v25 }
 0x393   : > { %v945_v27 = vpop.f32.mrf.mxu1 }
 0x394   : > { %v976_v28 = vadd.f32 %v945_v27, %v860_v26 }
 0x396   : > { %992 = vst [vmem:[%s1820_s4 + $0x30] sm:$0xff] %v976_v28 }
 0x397   : > { %v962_v30 = vpop.f32.mrf.mxu3 }
 0x398   : > { %v983_v31 = vadd.f32 %v962_v30, %v867_v29 }
 0x39a   : > { %999 = vst [vmem:[%s1820_s4 + $0x68] sm:$0xff] %v983_v31 }
 0x39b   : > { %v947_v33 = vpop.f32.mrf.mxu1 }
 0x39c   : > { %v977_v34 = vadd.f32 %v947_v33, %v861_v32 }
 0x39e   : > { %993 = vst [vmem:[%s1820_s4 + $0x38] sm:$0xff] %v977_v34 }
 0x39f   : > { %v965_v36 = vpop.f32.mrf.mxu3 }
 0x3a0   : > { %v984_v37 = vadd.f32 %v965_v36, %v868_v35 }
 0x3a2   : > { %1000 = vst [vmem:[%s1820_s4 + $0x70] sm:$0xff] %v984_v37 }
 0x3a3   : > { %v950_v39 = vpop.f32.mrf.mxu1 }
 0x3a4   : > { %v978_v40 = vadd.f32 %v950_v39, %v862_v38 }
 0x3a6   : > { %994 = vst [vmem:[%s1820_s4 + $0x40] sm:$0xff] %v978_v40 }
 0x3a7   : > { %v967_v42 = vpop.f32.mrf.mxu3 }
 0x3a8   : > { %v985_v43 = vadd.f32 %v967_v42, %v869_v41 }
 0x3aa   : > { %1001 = vst [vmem:[%s1820_s4 + $0x78] sm:$0xff] %v985_v43 }
 0x3ab   : > { %v952_v45 = vpop.f32.mrf.mxu1 }
 0x3ac   : > { %v979_v46 = vadd.f32 %v952_v45, %v863_v44 }
 0x3ae   : > { %995 = vst [vmem:[%s1820_s4 + $0x48] sm:$0xff] %v979_v46 }
 0x3af PF: > { %s15_s17 = sadd.s32 1, %s1354_s17   ;;  %s1821_s15 = smov %s1350_s16 }
 0x3b0   : > { %p12_p12 = scmp.ge.s32.totalorder %s15_s17, 4   ;;  %s1822_s16 = smov %s1824_s19 }
 0x3b2   :  { %14 = sbr.rel (!%p12_p12) target bundleno = 2 (0x2), region = 84 }
 0x3b7   :  { %1013 = vsyncpa [#allocation5], 1 }
 0x3b8   :  { %1015 = vsyncpa [#allocation5 + $0x1], 1 }

</bundles_post_ra>
